<compile_context>
chip_gen: v6e
topology: v6e:2x2x1
jax: 0.10.0
libtpu: 0.0.40
codegen_flags: <defaults>
</compile_context>

<pallas_src>
import jax
import jax.numpy as jnp
from jax.experimental import pallas as pl
from jax.experimental.pallas import tpu as pltpu

H1_PAD = 512        # 400 padded to a multiple of 128
H2_PAD = 384        # 300 padded to a multiple of 128 (do NOT round further)
A_PAD = 128         # action dim padded to one full lane group
TILE_M_MAX = 1024   # max batch rows per grid step (VMEM use stays tiny everywhere)
PARALLEL_MIN_ROWS = 2048  # only split across TCs for genuinely large batches


def _round_up(n, m):
    return ((n + m - 1) // m) * m


def actor_kernel(scale_ref, x_ref, w1_ref, b1_ref, w2_ref, b2_ref, w3_ref,
                 b3_ref, o_ref):
    scale = scale_ref[0]                          # f32 scalar from SMEM

    # layer1: Linear(state_dim, 512pad) + ReLU  -- f32 x, f32 w1 (precision-safe)
    h1 = jnp.dot(x_ref[...], w1_ref[...], preferred_element_type=jnp.float32)
    h1 = jnp.maximum(h1 + b1_ref[...], 0.0)

    # layer2: Linear(512pad, 384pad) + ReLU  -- bf16 operands, f32 accumulate
    h2 = jnp.dot(h1.astype(jnp.bfloat16), w2_ref[...],
                 preferred_element_type=jnp.float32)
    h2 = jnp.maximum(h2 + b2_ref[...], 0.0)

    # layer3: Linear(384pad, 128pad) + tanh, scaled by max_action
    y = jnp.dot(h2.astype(jnp.bfloat16), w3_ref[...],
                preferred_element_type=jnp.float32)
    y = jnp.tanh(y + b3_ref[...])

    o_ref[...] = (y * scale).astype(o_ref.dtype)


def _choose_tile(B):
    """Return (padded_batch, tile_rows, n_steps) minimizing batch padding."""
    Bp = _round_up(B, 8)
    if Bp <= TILE_M_MAX:
        return Bp, Bp, 1
    n = pl.cdiv(Bp, TILE_M_MAX)
    tm = _round_up(pl.cdiv(Bp, n), 8)
    return tm * n, tm, n


def actor_forward(x, packed_params, max_action, action_dim):
    """x: [batch, state_dim] f32 -> [batch, action_dim] f32."""
    w1, b1, w2, b2, w3, b3 = packed_params
    B, S = x.shape
    H1 = w1.shape[1]
    H2 = w2.shape[1]
    AP = w3.shape[1]

    Bp, tm, n_steps = _choose_tile(B)
    if Bp != B:
        x = jnp.pad(x, ((0, Bp - B), (0, 0)))

    scale = jnp.full((1,), max_action, jnp.float32)
    const = lambda i: (0, 0)     # weights / biases: same block every grid step
    single = pl.Buffered(1)      # constant blocks: no second (unused) VMEM buffer

    # Only shard the batch grid across TensorCores when the batch is large
    # enough to amortize the duplicated weight DMA / per-core launch cost.
    semantics = ("parallel",) if Bp >= PARALLEL_MIN_ROWS else ("arbitrary",)

    out = pl.pallas_call(
        actor_kernel,
        out_shape=jax.ShapeDtypeStruct((Bp, AP), jnp.float32),
        grid=(n_steps,),
        in_specs=[
            pl.BlockSpec(memory_space=pltpu.MemorySpace.SMEM),          # max_action
            pl.BlockSpec((tm, S), lambda i: (i, 0)),                    # x tile (double-buffered)
            pl.BlockSpec((S, H1), const, pipeline_mode=single),         # w1 (f32)
            pl.BlockSpec((1, H1), const, pipeline_mode=single),         # b1 (f32)
            pl.BlockSpec((H1, H2), const, pipeline_mode=single),        # w2 (bf16)
            pl.BlockSpec((1, H2), const, pipeline_mode=single),         # b2 (f32)
            pl.BlockSpec((H2, AP), const, pipeline_mode=single),        # w3 (bf16)
            pl.BlockSpec((1, AP), const, pipeline_mode=single),         # b3 (f32)
        ],
        out_specs=pl.BlockSpec((tm, AP), lambda i: (i, 0)),
        compiler_params=pltpu.CompilerParams(dimension_semantics=semantics),
    )(scale, x, w1, b1, w2, b2, w3, b3)

    return out[:B, :action_dim]


def init_actor_params(key, state_dim, action_dim):
    """Logical f32 params matching nn.Linear default init (uniform +-1/sqrt(fan_in)).

    Weights stored as [in, out] (transpose of PyTorch layout); biases as [1, out].
    """
    dims = [(state_dim, 400), (400, 300), (300, action_dim)]
    params = []
    for fan_in, fan_out in dims:
        key, kw, kb = jax.random.split(key, 3)
        bound = 1.0 / float(fan_in) ** 0.5
        w = jax.random.uniform(kw, (fan_in, fan_out), jnp.float32, -bound, bound)
        b = jax.random.uniform(kb, (1, fan_out), jnp.float32, -bound, bound)
        params.extend([w, b])
    return tuple(params)


def pack_actor_params(params, h1_pad=H1_PAD, h2_pad=H2_PAD, a_pad=A_PAD):
    """Zero-pad hidden/action dims to lane-aligned widths; cast w2/w3 to bf16.

    Zero padding is exact: padded hidden units are ReLU(0)=0 and their outgoing
    weight rows are zero; padded action columns are sliced off by the wrapper.
    Layer-1 weights stay f32 so the raw observation precision is preserved.
    """
    w1, b1, w2, b2, w3, b3 = params
    S = w1.shape[0]
    A = w3.shape[1]
    a_pad = max(a_pad, _round_up(A, 128))

    w1p = jnp.zeros((S, h1_pad), jnp.float32).at[:, :w1.shape[1]].set(w1)
    b1p = jnp.zeros((1, h1_pad), jnp.float32).at[:, :b1.shape[1]].set(b1)
    w2p = jnp.zeros((h1_pad, h2_pad), jnp.float32).at[:w2.shape[0], :w2.shape[1]].set(w2)
    b2p = jnp.zeros((1, h2_pad), jnp.float32).at[:, :b2.shape[1]].set(b2)
    w3p = jnp.zeros((h2_pad, a_pad), jnp.float32).at[:w3.shape[0], :A].set(w3)
    b3p = jnp.zeros((1, a_pad), jnp.float32).at[:, :A].set(b3)

    return (w1p, b1p,
            w2p.astype(jnp.bfloat16), b2p,
            w3p.astype(jnp.bfloat16), b3p)


def actor_reference_packed(x, packed_params, max_action, action_dim):
    """Pure-JAX reference mirroring the kernel's mixed-precision math."""
    w1, b1, w2, b2, w3, b3 = packed_params
    h1 = jax.nn.relu(jnp.dot(x, w1, preferred_element_type=jnp.float32) + b1)
    h2 = jax.nn.relu(jnp.dot(h1.astype(jnp.bfloat16), w2,
                             preferred_element_type=jnp.float32) + b2)
    y = jnp.tanh(jnp.dot(h2.astype(jnp.bfloat16), w3,
                         preferred_element_type=jnp.float32) + b3)
    return (y * max_action)[:, :action_dim]


def actor_reference_f32(x, params, max_action):
    """Full-f32 reference matching the PyTorch module exactly (loose sanity check)."""
    w1, b1, w2, b2, w3, b3 = params
    h1 = jax.nn.relu(x @ w1 + b1)
    h2 = jax.nn.relu(h1 @ w2 + b2)
    return jnp.tanh(h2 @ w3 + b3) * max_action


if __name__ == "__main__":
    state_dim = 32
    action_dim = 8
    max_action = 2.0

    key = jax.random.PRNGKey(0)
    key, kx1, kx2, kx3 = jax.random.split(key, 4)

    params = init_actor_params(key, state_dim, action_dim)
    packed = pack_actor_params(params)

    # --- small inference-style batch ---
    batch = 2
    x = jax.random.normal(kx1, (batch, state_dim), jnp.float32)
    out = jax.block_until_ready(actor_forward(x, packed, max_action, action_dim))
    assert out.shape == (batch, action_dim)

    ref_q = actor_reference_packed(x, packed, max_action, action_dim)
    ref_f = actor_reference_f32(x, params, max_action)
    assert jnp.allclose(out, ref_q, atol=1e-3, rtol=1e-3)   # kernel vs same-precision ref
    assert jnp.allclose(out, ref_f, atol=1e-1, rtol=1e-1)   # bf16 weights vs f32 module

    # --- training-style batch: single 304-row block (no 256-tile padding waste) ---
    batch2 = 300
    x2 = jax.random.normal(kx2, (batch2, state_dim), jnp.float32)
    out2 = jax.block_until_ready(actor_forward(x2, packed, max_action, action_dim))
    assert out2.shape == (batch2, action_dim)
    ref_q2 = actor_reference_packed(x2, packed, max_action, action_dim)
    assert jnp.allclose(out2, ref_q2, atol=1e-3, rtol=1e-3)

    # --- large batch: exercises the multi-step grid + parallel-semantics path ---
    batch3 = 2500
    x3 = jax.random.normal(kx3, (batch3, state_dim), jnp.float32)
    out3 = jax.block_until_ready(actor_forward(x3, packed, max_action, action_dim))
    assert out3.shape == (batch3, action_dim)
    ref_q3 = actor_reference_packed(x3, packed, max_action, action_dim)
    assert jnp.allclose(out3, ref_q3, atol=1e-3, rtol=1e-3)

    print("KERNEL_OK")
</pallas_src>

<mosaic_0001>
module attributes {stable_mosaic.version = 11 : i64} {
  func.func @actor_kernel(%arg0: i32, %arg1: memref<1xf32, #tpu.memory_space<smem>>, %arg2: memref<8x32xf32, #tpu.memory_space<vmem>>, %arg3: memref<32x512xf32, #tpu.memory_space<vmem>>, %arg4: memref<1x512xf32, #tpu.memory_space<vmem>>, %arg5: memref<512x384xbf16, #tpu.memory_space<vmem>>, %arg6: memref<1x384xf32, #tpu.memory_space<vmem>>, %arg7: memref<384x128xbf16, #tpu.memory_space<vmem>>, %arg8: memref<1x128xf32, #tpu.memory_space<vmem>>, %arg9: memref<8x128xf32, #tpu.memory_space<vmem>>) attributes {dimension_semantics = [#tpu.dimension_semantics<arbitrary>], iteration_bounds = array<i64: 1>, scalar_prefetch = 0 : i64, scratch_operands = 0 : i64, tpu.core_type = #tpu.core_type<tc>, window_params = [{transform_indices = @transform_0, window_bounds = array<i64: 1>}, {transform_indices = @transform_1, window_bounds = array<i64: 8, 32>}, {pipeline_mode = #tpu.pipeline_mode<synchronous>, transform_indices = @transform_2, window_bounds = array<i64: 32, 512>}, {pipeline_mode = #tpu.pipeline_mode<synchronous>, transform_indices = @transform_3, window_bounds = array<i64: 1, 512>}, {pipeline_mode = #tpu.pipeline_mode<synchronous>, transform_indices = @transform_4, window_bounds = array<i64: 512, 384>}, {pipeline_mode = #tpu.pipeline_mode<synchronous>, transform_indices = @transform_5, window_bounds = array<i64: 1, 384>}, {pipeline_mode = #tpu.pipeline_mode<synchronous>, transform_indices = @transform_6, window_bounds = array<i64: 384, 128>}, {pipeline_mode = #tpu.pipeline_mode<synchronous>, transform_indices = @transform_7, window_bounds = array<i64: 1, 128>}, {transform_indices = @transform_8, window_bounds = array<i64: 8, 128>}]} {
    %c0 = arith.constant 0 : index
    %0 = memref.load %arg1[%c0] : memref<1xf32, #tpu.memory_space<smem>>
    %c0_0 = arith.constant 0 : index
    %c0_1 = arith.constant 0 : index
    %1 = vector.load %arg2[%c0_0, %c0_1] : memref<8x32xf32, #tpu.memory_space<vmem>>, vector<8x32xf32>
    %c0_2 = arith.constant 0 : index
    %c0_3 = arith.constant 0 : index
    %2 = vector.load %arg3[%c0_2, %c0_3] : memref<32x512xf32, #tpu.memory_space<vmem>>, vector<32x512xf32>
    %cst = arith.constant dense<0.000000e+00> : vector<8x512xf32>
    %3 = tpu.matmul %1, %2, %cst {dimension_numbers = #tpu.dot_dimension_numbers<[1], [0], [0], [1], [0, 0, 1, 1], [], []>} : vector<8x32xf32>, vector<32x512xf32>, vector<8x512xf32> -> vector<8x512xf32>
    %c0_4 = arith.constant 0 : index
    %c0_5 = arith.constant 0 : index
    %4 = vector.load %arg4[%c0_4, %c0_5] : memref<1x512xf32, #tpu.memory_space<vmem>>, vector<1x512xf32>
    %5 = vector.broadcast %4 : vector<1x512xf32> to vector<8x512xf32>
    %6 = arith.addf %3, %5 : vector<8x512xf32>
    %cst_6 = arith.constant 0.000000e+00 : f32
    %7 = vector.broadcast %cst_6 : f32 to vector<8x512xf32>
    %8 = arith.maximumf %6, %7 : vector<8x512xf32>
    %9 = arith.truncf %8 : vector<8x512xf32> to vector<8x512xbf16>
    %c0_7 = arith.constant 0 : index
    %c0_8 = arith.constant 0 : index
    %10 = vector.load %arg5[%c0_7, %c0_8] : memref<512x384xbf16, #tpu.memory_space<vmem>>, vector<512x384xbf16>
    %cst_9 = arith.constant dense<0.000000e+00> : vector<8x384xf32>
    %11 = tpu.matmul %9, %10, %cst_9 {dimension_numbers = #tpu.dot_dimension_numbers<[1], [0], [0], [1], [0, 0, 1, 1], [], []>} : vector<8x512xbf16>, vector<512x384xbf16>, vector<8x384xf32> -> vector<8x384xf32>
    %c0_10 = arith.constant 0 : index
    %c0_11 = arith.constant 0 : index
    %12 = vector.load %arg6[%c0_10, %c0_11] : memref<1x384xf32, #tpu.memory_space<vmem>>, vector<1x384xf32>
    %13 = vector.broadcast %12 : vector<1x384xf32> to vector<8x384xf32>
    %14 = arith.addf %11, %13 : vector<8x384xf32>
    %cst_12 = arith.constant 0.000000e+00 : f32
    %15 = vector.broadcast %cst_12 : f32 to vector<8x384xf32>
    %16 = arith.maximumf %14, %15 : vector<8x384xf32>
    %17 = arith.truncf %16 : vector<8x384xf32> to vector<8x384xbf16>
    %c0_13 = arith.constant 0 : index
    %c0_14 = arith.constant 0 : index
    %18 = vector.load %arg7[%c0_13, %c0_14] : memref<384x128xbf16, #tpu.memory_space<vmem>>, vector<384x128xbf16>
    %cst_15 = arith.constant dense<0.000000e+00> : vector<8x128xf32>
    %19 = tpu.matmul %17, %18, %cst_15 {dimension_numbers = #tpu.dot_dimension_numbers<[1], [0], [0], [1], [0, 0, 1, 1], [], []>} : vector<8x384xbf16>, vector<384x128xbf16>, vector<8x128xf32> -> vector<8x128xf32>
    %c0_16 = arith.constant 0 : index
    %c0_17 = arith.constant 0 : index
    %20 = vector.load %arg8[%c0_16, %c0_17] : memref<1x128xf32, #tpu.memory_space<vmem>>, vector<1x128xf32>
    %21 = vector.broadcast %20 : vector<1x128xf32> to vector<8x128xf32>
    %22 = arith.addf %19, %21 : vector<8x128xf32>
    %23 = math.tanh %22 : vector<8x128xf32>
    %24 = vector.broadcast %0 : f32 to vector<8x128xf32>
    %25 = arith.mulf %23, %24 : vector<8x128xf32>
    %c0_18 = arith.constant 0 : index
    %c0_19 = arith.constant 0 : index
    %26 = vector.load %arg9[%c0_18, %c0_19] : memref<8x128xf32, #tpu.memory_space<vmem>>, vector<8x128xf32>
    tpu.vector_store %arg9[%c0_18, %c0_19], %25 {strides = array<i32>} : memref<8x128xf32, #tpu.memory_space<vmem>>, vector<8x128xf32>,
    return
  }
  func.func @transform_0(%arg0: i32) -> i32 {
    %c0_i32 = arith.constant 0 : i32
    %c0_i32_0 = arith.constant 0 : i32
    return %c0_i32 : i32
  }
  func.func @transform_1(%arg0: i32) -> (i32, i32) {
    %c0_i32 = arith.constant 0 : i32
    %c0_i32_0 = arith.constant 0 : i32
    return %arg0, %c0_i32 : i32, i32
  }
  func.func @transform_2(%arg0: i32) -> (i32, i32) {
    %c0_i32 = arith.constant 0 : i32
    %c0_i32_0 = arith.constant 0 : i32
    %c0_i32_1 = arith.constant 0 : i32
    return %c0_i32, %c0_i32_0 : i32, i32
  }
  func.func @transform_3(%arg0: i32) -> (i32, i32) {
    %c0_i32 = arith.constant 0 : i32
    %c0_i32_0 = arith.constant 0 : i32
    %c0_i32_1 = arith.constant 0 : i32
    return %c0_i32, %c0_i32_0 : i32, i32
  }
  func.func @transform_4(%arg0: i32) -> (i32, i32) {
    %c0_i32 = arith.constant 0 : i32
    %c0_i32_0 = arith.constant 0 : i32
    %c0_i32_1 = arith.constant 0 : i32
    return %c0_i32, %c0_i32_0 : i32, i32
  }
  func.func @transform_5(%arg0: i32) -> (i32, i32) {
    %c0_i32 = arith.constant 0 : i32
    %c0_i32_0 = arith.constant 0 : i32
    %c0_i32_1 = arith.constant 0 : i32
    return %c0_i32, %c0_i32_0 : i32, i32
  }
  func.func @transform_6(%arg0: i32) -> (i32, i32) {
    %c0_i32 = arith.constant 0 : i32
    %c0_i32_0 = arith.constant 0 : i32
    %c0_i32_1 = arith.constant 0 : i32
    return %c0_i32, %c0_i32_0 : i32, i32
  }
  func.func @transform_7(%arg0: i32) -> (i32, i32) {
    %c0_i32 = arith.constant 0 : i32
    %c0_i32_0 = arith.constant 0 : i32
    %c0_i32_1 = arith.constant 0 : i32
    return %c0_i32, %c0_i32_0 : i32, i32
  }
  func.func @transform_8(%arg0: i32) -> (i32, i32) {
    %c0_i32 = arith.constant 0 : i32
    %c0_i32_0 = arith.constant 0 : i32
    return %arg0, %c0_i32 : i32, i32
  }
}

</mosaic_0001>

<bundles_post_ra>
// kernel: tpu_custom_call.1
= control target key start
LH: loop header
LB: loop body
LE: loop exit
PB: predicated region body
PF: predicated region fallthrough
CT: control target
= control target key end

     0   :  { %14 = vsyncpa [#allocation4], 0  ;;  %s2019_s0 = inlined_call_operand.<no memory space> [shape: f32[1], index: 0, kind: input, shape index: {}]   ;;  %s2020_s1 = inlined_call_operand.hbm [shape: f32[8,32], index: 1, kind: input, shape index: {}]   ;;  %s2021_s2 = inlined_call_operand.hbm [shape: f32[32,512], index: 2, kind: input, shape index: {}]   ;;  %s2022_s3 = inlined_call_operand.vmem [shape: f32[1,512], index: 3, kind: input, shape index: {}]   ;;  %s2023_s4 = inlined_call_operand.hbm [shape: bf16[512,384], index: 4, kind: input, shape index: {}]   ;;  %s2024_s5 = inlined_call_operand.vmem [shape: f32[1,384], index: 5, kind: input, shape index: {}]   ;;  %s2025_s6 = inlined_call_operand.hbm [shape: bf16[384,128], index: 6, kind: input, shape index: {}]   ;;  %s2026_s7 = inlined_call_operand.vmem [shape: f32[1,128], index: 7, kind: input, shape index: {}]   ;;  %s2027_s8 = inlined_call_operand.hbm [shape: f32[8,128], index: 8, kind: output, shape index: {}]  }
   0x1   :  { %15 = vsyncpa [#allocation7], 0 }
   0x2   :  { %16 = vsyncpa [#allocation10], 0 }
   0x3   :  { %17 = vsyncpa [#allocation5], 0  ;;  %s1897_s27 = smov [#allocation6]  }
   0x4   :  { %s35_s28 = sshll.u32 %s1897_s27, 4  ;;  %s36_s28 = int_to_ptr.vmem [resolvable:$true] %s35_s28 }
   0x5   :  { %s1797_s29 = scalar_lea.vmem %s36_s28, 2048  ;;  %p1802_p1 = scmp.lt.s32.totalorder %s36_s28, %s36_s28 }
   0x6   :  { %p1798_p0 = scmp.ne.s32.totalorder %s36_s28, %s1797_s29  ;;  %p1803_p2 = scmp.lt.s32.totalorder %s1797_s29, %s1797_s29 }
   0x8   :  { %p1804_p3 = por %p1803_p2, %p1802_p1 }
   0xa   :  { %p1805_p4 = pnand %p1804_p3, %p1798_p0 }
   0xc   :  { %1808 = shalt.err (!%p1805_p4)
}
   0xd   :  { %s1898_s30 = smov 512   ;;  %s1899_s9 = smov 32  }
   0xe   :  { %41 = dma.hbm_to_vmem [thread:$0]  %s2021_s2, 2048, %s36_s28, [#allocation7], %s1898_s30, %s1898_s30, %s1899_s9  }
   0xf   :  { %s1900_s12 = smov [#allocation3]   ;;  %s1901_s14 = smov [#allocation8]  }
  0x10   :  { %s26_s13 = sshll.u32 %s1900_s12, 4  ;;  %s49_s15 = sshll.u32 %s1901_s14, 4  ;;  %s27_s13 = int_to_ptr.vmem [resolvable:$true] %s26_s13  ;;  %s50_s15 = int_to_ptr.vmem [resolvable:$true] %s49_s15 }
  0x11   :  { %s1817_s16 = scalar_lea.vmem %s27_s13, 128  ;;  %p1822_p6 = scmp.lt.s32.totalorder %s27_s13, %s27_s13 }
  0x12   :  { %p1818_p5 = scmp.ne.s32.totalorder %s27_s13, %s1817_s16  ;;  %p1823_p7 = scmp.lt.s32.totalorder %s1817_s16, %s1817_s16 }
  0x14   :  { %p1824_p8 = por %p1823_p7, %p1822_p6 }
  0x16   :  { %p1825_p9 = pnand %p1824_p8, %p1818_p5 }
  0x18   :  { %1828 = shalt.err (!%p1825_p9)
}
  0x19   :  { %29 = dma.hbm_to_vmem [thread:$0]  %s2020_s1, 128, %s27_s13, [#allocation4]  }
  0x1a   :  { %s1837_s19 = scalar_lea.vmem %s50_s15, 12288  ;;  %p1842_p11 = scmp.lt.s32.totalorder %s50_s15, %s50_s15 }
  0x1b   :  { %p1838_p10 = scmp.ne.s32.totalorder %s50_s15, %s1837_s19  ;;  %p1843_p12 = scmp.lt.s32.totalorder %s1837_s19, %s1837_s19 }
  0x1d   :  { %p1844_p13 = por %p1843_p12, %p1842_p11 }
  0x1f   :  { %p1845_p0 = pnand %p1844_p13, %p1838_p10 }
  0x21   :  { %1848 = shalt.err (!%p1845_p0)
}
  0x22   :  { %s1902_s2 = smov 192   ;;  %s1903_s20 = smov 12  }
  0x23   :  { %55 = dma.hbm_to_vmem [thread:$0]  %s2023_s4, 12288, %s50_s15, [#allocation7], %s1902_s2, %s1902_s2, %s1903_s20  }
  0x24   :  { %s1904_s23 = smov [#allocation9]  }
  0x25   :  { %s63_s24 = sshll.u32 %s1904_s23, 4  ;;  %s64_s24 = int_to_ptr.vmem [resolvable:$true] %s63_s24 }
  0x26   :  { %s1857_s25 = scalar_lea.vmem %s64_s24, 3072  ;;  %p1862_p2 = scmp.lt.s32.totalorder %s64_s24, %s64_s24 }
  0x27   :  { %p1858_p1 = scmp.ne.s32.totalorder %s64_s24, %s1857_s25  ;;  %p1863_p3 = scmp.lt.s32.totalorder %s1857_s25, %s1857_s25 }
  0x29   :  { %p1864_p4 = por %p1863_p3, %p1862_p2 }
  0x2b   :  { %p1865_p5 = pnand %p1864_p4, %p1858_p1 }
  0x2d   :  { %1868 = shalt.err (!%p1865_p5)
}
  0x2e   :  { %s1905_s1 = smov 64   ;;  %s1906_s26 = smov 4  }
  0x2f   :  { %69 = dma.hbm_to_vmem [thread:$0]  %s2025_s6, 3072, %s64_s24, [#allocation10], %s1905_s1, %s1905_s1, %s1906_s26  }
  0x30   :  { %1889 = dma.done.wait [#allocation4], 128  }
  0x31   :  { %1890 = vsyncadd [#allocation4], 4294967168 }
  0x32   :  { %1891 = dma.done.wait [#allocation7], 14336  }
  0x33   :  { %1892 = vsyncadd [#allocation7], 4294952960 }
  0x34   :  { %1893 = dma.done.wait [#allocation10], 3072  }
  0x35   :  { %1894 = vsyncadd [#allocation10], 4294964224  ;;  %v1907_v0 = vmov 0.0   ;;  %v100_v1 = vld [vmem:[#allocation6 + $0x68] sm:$0xff]  ;;  %v102_v2 = vld [vmem:[#allocation6 + $0x78] sm:$0xff]  ;;  %vm125_vm0 = vcmask 261120  }
  0x36   :  { %193 = vmatprep.mubr.f32.mxu0 %v1907_v0  ;;  %264 = vmatprep.mubr.f32.mxu1 %v1907_v0  ;;  %v99_v3 = vld [vmem:[#allocation6 + $0x60] sm:$0xff]  ;;  %v101_v4 = vld [vmem:[#allocation6 + $0x70] sm:$0xff]  ;;  %v96_v5 = vld [vmem:[#allocation6 + $0x48] sm:$0xff]  ;;  %vm1908_vm1 = vmmov 0   ;;  %s1909_s11 = smov [#allocation11]  }
  0x37   :  { %153 = vmatprep.subr.mxu0 %v100_v1  ;;  %224 = vmatprep.subr.mxu1 %v102_v2  ;;  %v98_v6 = vld [vmem:[#allocation6 + $0x58] sm:$0xff]  ;;  %v95_v7 = vld [vmem:[#allocation6 + $0x40] sm:$0xff]  ;;  %v97_v8 = vld [vmem:[#allocation6 + $0x50] sm:$0xff]  ;;  %s1393_s12 = sshll.u32 %s1909_s11, 4  ;;  %s1394_s12 = int_to_ptr.vmem [resolvable:$true] %s1393_s12 }
  0x38   :  { %154 = vmatpush1.msra.mxu0 %v99_v3  ;;  %225 = vmatpush1.msra.mxu1 %v101_v4  ;;  %v92_v9 = vld [vmem:[#allocation6 + $0x28] sm:$0xff]  ;;  %v94_v10 = vld [vmem:[#allocation6 + $0x38] sm:$0xff]  ;;  %v91_v11 = vld [vmem:[#allocation6 + $0x20] sm:$0xff]  ;;  %s1869_s13 = scalar_lea.vmem %s1394_s12, 128  ;;  %p1874_p7 = scmp.lt.s32.totalorder %s1394_s12, %s1394_s12 }
  0x39   :  { %155 = vmatprep.subr.mxu0 %v96_v5  ;;  %226 = vmatprep.subr.mxu1 %v98_v6  ;;  %v93_v12 = vld [vmem:[#allocation6 + $0x30] sm:$0xff]  ;;  %v88_v13 = vld [vmem:[#allocation6 + $0x8] sm:$0xff]  ;;  %v90_v14 = vld [vmem:[#allocation6 + $0x18] sm:$0xff]  ;;  %p1870_p6 = scmp.ne.s32.totalorder %s1394_s12, %s1869_s13  ;;  %p1875_p8 = scmp.lt.s32.totalorder %s1869_s13, %s1869_s13 }
  0x3a   :  { %156 = vmatpush1.msra.mxu0 %v95_v7  ;;  %227 = vmatpush1.msra.mxu1 %v97_v8  ;;  %v87_v15 = vld [vmem:[#allocation6] sm:$0xff]  ;;  %v89_v16 = vld [vmem:[#allocation6 + $0x10] sm:$0xff]  ;;  %v86_v17 = vld [vmem:[#allocation3] sm:$0xff] }
  0x3b   :  { %157 = vmatprep.subr.mxu0 %v92_v9  ;;  %228 = vmatprep.subr.mxu1 %v94_v10  ;;  %v1635_v18 = vld [vmem:[#allocation8 + $0xa8] ss:$12 sps:$4 sm:$0xff]   ;;  %v1637_v19 = vld [vmem:[#allocation8 + $0xac] ss:$12 sps:$4 sm:$0xff]   ;;  %v1641_v23 = vld [vmem:[#allocation8 + $0x90] ss:$12 sps:$4 sm:$0xff]   ;;  %p1876_p9 = por %p1875_p8, %p1874_p7 }
  0x3c   :  { %158 = vmatpush1.msra.mxu0 %v91_v11  ;;  %229 = vmatpush1.msra.mxu1 %v93_v12  ;;  %v1638_v20 = vld [vmem:[#allocation8 + $0x228] ss:$12 sps:$4 sm:$0xff]   ;;  %v1640_v21 = vld [vmem:[#allocation8 + $0x22c] ss:$12 sps:$4 sm:$0xff]   ;;  %v1644_v25 = vld [vmem:[#allocation8 + $0x210] ss:$12 sps:$4 sm:$0xff]  }
  0x3d   :  { %159 = vmatprep.subr.mxu0 %v88_v13  ;;  %230 = vmatprep.subr.mxu1 %v90_v14  ;;  %v1643_v22 = vld [vmem:[#allocation8 + $0x94] ss:$12 sps:$4 sm:$0xff]   ;;  %v1649_v26 = vld [vmem:[#allocation8 + $0x7c] ss:$12 sps:$4 sm:$0xff]   ;;  %v1647_v28 = vld [vmem:[#allocation8 + $0x78] ss:$12 sps:$4 sm:$0xff]   ;;  %p1877_p10 = pnand %p1876_p9, %p1870_p6 }
  0x3e   :  { %160 = vmatpush1.msra.mxu0 %v87_v15  ;;  %231 = vmatpush1.msra.mxu1 %v89_v16  ;;  %v1646_v24 = vld [vmem:[#allocation8 + $0x214] ss:$12 sps:$4 sm:$0xff]   ;;  %v1652_v27 = vld [vmem:[#allocation8 + $0x1fc] ss:$12 sps:$4 sm:$0xff]   ;;  %v1650_v29 = vld [vmem:[#allocation8 + $0x1f8] ss:$12 sps:$4 sm:$0xff]  }
  0x3f   :  { %1404 = vmatmul.mubr.msk.f32.vlgmr.msra.gmra.mxu0 %vm125_vm0, %v86_v17  ;;  %1405 = vmatmul.mubr.msk.f32.vlgmr.msra.gmra.mxu1 %vm125_vm0, %v86_v17  ;;  %v1655_v30 = vld [vmem:[#allocation8 + $0x64] ss:$12 sps:$4 sm:$0xff]   ;;  %v1653_v32 = vld [vmem:[#allocation8 + $0x60] ss:$12 sps:$4 sm:$0xff]   ;;  %v1659_v36 = vld [vmem:[#allocation8 + $0x48] ss:$12 sps:$4 sm:$0xff]  }
  0x40   :  { %936 = vmatprep.subr.bf16.mxu0 %v1637_v19  ;;  %977 = vmatprep.subr.bf16.mxu1 %v1640_v21  ;;  %v1658_v31 = vld [vmem:[#allocation8 + $0x1e4] ss:$12 sps:$4 sm:$0xff]   ;;  %v1656_v33 = vld [vmem:[#allocation8 + $0x1e0] ss:$12 sps:$4 sm:$0xff]   ;;  %v1662_v37 = vld [vmem:[#allocation8 + $0x1c8] ss:$12 sps:$4 sm:$0xff]   ;;  %v105_v21 = vlaneseq }
  0x41   :  { %937 = vmatpush1.bf16.msra.mxu0 %v1635_v18  ;;  %978 = vmatpush1.bf16.msra.mxu1 %v1638_v20  ;;  %v1661_v34 = vld [vmem:[#allocation8 + $0x4c] ss:$12 sps:$4 sm:$0xff]   ;;  %v1667_v38 = vld [vmem:[#allocation8 + $0x34] ss:$12 sps:$4 sm:$0xff]   ;;  %v1665_v40 = vld [vmem:[#allocation8 + $0x30] ss:$12 sps:$4 sm:$0xff]  }
  0x42   :  { %938 = vmatprep.subr.bf16.mxu0 %v1643_v22  ;;  %979 = vmatprep.subr.bf16.mxu1 %v1646_v24  ;;  %v1664_v35 = vld [vmem:[#allocation8 + $0x1cc] ss:$12 sps:$4 sm:$0xff]   ;;  %v1670_v39 = vld [vmem:[#allocation8 + $0x1b4] ss:$12 sps:$4 sm:$0xff]   ;;  %v1668_v41 = vld [vmem:[#allocation8 + $0x1b0] ss:$12 sps:$4 sm:$0xff]  }
  0x43   :  { %v1673_v42 = vld [vmem:[#allocation8 + $0x1c] ss:$12 sps:$4 sm:$0xff]   ;;  %v1671_v44 = vld [vmem:[#allocation8 + $0x18] ss:$12 sps:$4 sm:$0xff]   ;;  %v1677_v48 = vld [vmem:[#allocation8] ss:$12 sps:$4 sm:$0xff]  }
  0x44   :  { %v1676_v43 = vld [vmem:[#allocation8 + $0x19c] ss:$12 sps:$4 sm:$0xff]   ;;  %v1674_v45 = vld [vmem:[#allocation8 + $0x198] ss:$12 sps:$4 sm:$0xff]   ;;  %v1680_v49 = vld [vmem:[#allocation8 + $0x180] ss:$12 sps:$4 sm:$0xff]  }
  0x45   :  { %939 = vmatpush1.bf16.msra.mxu0 %v1641_v23  ;;  %980 = vmatpush1.bf16.msra.mxu1 %v1644_v25  ;;  %v1679_v46 = vld [vmem:[#allocation8 + $0x4] ss:$12 sps:$4 sm:$0xff]   ;;  %v1685_v50 = vld [vmem:[#allocation8 + $0x16c] ss:$12 sps:$4 sm:$0xff]   ;;  %v1683_v52 = vld [vmem:[#allocation8 + $0x168] ss:$12 sps:$4 sm:$0xff]  }
  0x46   :  { %940 = vmatprep.subr.bf16.mxu0 %v1649_v26  ;;  %981 = vmatprep.subr.bf16.mxu1 %v1652_v27  ;;  %v1682_v47 = vld [vmem:[#allocation8 + $0x184] ss:$12 sps:$4 sm:$0xff]   ;;  %v1688_v51 = vld [vmem:[#allocation8 + $0x2ec] ss:$12 sps:$4 sm:$0xff]   ;;  %v1686_v53 = vld [vmem:[#allocation8 + $0x2e8] ss:$12 sps:$4 sm:$0xff]  }
  0x47   :  { %v1691_v54 = vld [vmem:[#allocation8 + $0x154] ss:$12 sps:$4 sm:$0xff]   ;;  %v1689_v56 = vld [vmem:[#allocation8 + $0x150] ss:$12 sps:$4 sm:$0xff]   ;;  %v1695_v60 = vld [vmem:[#allocation8 + $0x138] ss:$12 sps:$4 sm:$0xff]  }
  0x48   :  { %v1694_v55 = vld [vmem:[#allocation8 + $0x2d4] ss:$12 sps:$4 sm:$0xff]   ;;  %v1692_v57 = vld [vmem:[#allocation8 + $0x2d0] ss:$12 sps:$4 sm:$0xff]   ;;  %v1698_v61 = vld [vmem:[#allocation8 + $0x2b8] ss:$12 sps:$4 sm:$0xff]  }
  0x49   :  { %941 = vmatpush1.bf16.msra.mxu0 %v1647_v28  ;;  %982 = vmatpush1.bf16.msra.mxu1 %v1650_v29  ;;  %v1697_v58 = vld [vmem:[#allocation8 + $0x13c] ss:$12 sps:$4 sm:$0xff]   ;;  %v1703_v62 = vld [vmem:[#allocation8 + $0x124] ss:$12 sps:$4 sm:$0xff]   ;;  %v1701_v1 = vld [vmem:[#allocation8 + $0x120] ss:$12 sps:$4 sm:$0xff]  }
  0x4a   :  { %942 = vmatprep.subr.bf16.mxu0 %v1655_v30  ;;  %983 = vmatprep.subr.bf16.mxu1 %v1658_v31  ;;  %v1700_v59 = vld [vmem:[#allocation8 + $0x2bc] ss:$12 sps:$4 sm:$0xff]   ;;  %v1706_v63 = vld [vmem:[#allocation8 + $0x2a4] ss:$12 sps:$4 sm:$0xff]   ;;  %v1704_v2 = vld [vmem:[#allocation8 + $0x2a0] ss:$12 sps:$4 sm:$0xff]  }
  0x4b   :  { %v1709_v3 = vld [vmem:[#allocation8 + $0x10c] ss:$12 sps:$4 sm:$0xff]   ;;  %v1707_v5 = vld [vmem:[#allocation8 + $0x108] ss:$12 sps:$4 sm:$0xff]   ;;  %v1713_v9 = vld [vmem:[#allocation8 + $0xf0] ss:$12 sps:$4 sm:$0xff]  }
  0x4c   :  { %v1712_v4 = vld [vmem:[#allocation8 + $0x28c] ss:$12 sps:$4 sm:$0xff]   ;;  %v1710_v6 = vld [vmem:[#allocation8 + $0x288] ss:$12 sps:$4 sm:$0xff]   ;;  %v1716_v10 = vld [vmem:[#allocation8 + $0x270] ss:$12 sps:$4 sm:$0xff]  }
  0x4d   :  { %943 = vmatpush1.bf16.msra.mxu0 %v1653_v32  ;;  %984 = vmatpush1.bf16.msra.mxu1 %v1656_v33  ;;  %v1715_v7 = vld [vmem:[#allocation8 + $0xf4] ss:$12 sps:$4 sm:$0xff]   ;;  %v1721_v11 = vld [vmem:[#allocation8 + $0xdc] ss:$12 sps:$4 sm:$0xff]   ;;  %v1719_v13 = vld [vmem:[#allocation8 + $0xd8] ss:$12 sps:$4 sm:$0xff]  }
  0x4e   :  { %944 = vmatprep.subr.bf16.mxu0 %v1661_v34  ;;  %985 = vmatprep.subr.bf16.mxu1 %v1664_v35  ;;  %v1718_v8 = vld [vmem:[#allocation8 + $0x274] ss:$12 sps:$4 sm:$0xff]   ;;  %v1724_v12 = vld [vmem:[#allocation8 + $0x25c] ss:$12 sps:$4 sm:$0xff]   ;;  %v1722_v14 = vld [vmem:[#allocation8 + $0x258] ss:$12 sps:$4 sm:$0xff]  }
  0x4f   :  { %v1727_v15 = vld [vmem:[#allocation8 + $0xc4] ss:$12 sps:$4 sm:$0xff]   ;;  %v1725_v17 = vld [vmem:[#allocation8 + $0xc0] ss:$12 sps:$4 sm:$0xff]   ;;  %v1969_v22 = vshrl.u32 %v105_v21, 7 }
  0x50   :  { %v1730_v16 = vld [vmem:[#allocation8 + $0x244] ss:$12 sps:$4 sm:$0xff]   ;;  %v1728_v18 = vld [vmem:[#allocation8 + $0x240] ss:$12 sps:$4 sm:$0xff]   ;;  %v103_v25 = vld [vmem:[%s2022_s3] sm:$0xf] }
  0x51   :  { %945 = vmatpush1.bf16.msra.mxu0 %v1659_v36  ;;  %986 = vmatpush1.bf16.msra.mxu1 %v1662_v37  ;;  %v1731_v19 = vld [vmem:[#allocation8 + $0x170] ss:$12 sps:$4 sm:$0xff]   ;;  %v107_v23 = vsub.s32 0, %v1969_v22  ;;  %v115_v24 = vsub.s32 2, %v1969_v22  ;;  %v111_v26 = vsub.s32 1, %v1969_v22  ;;  %v119_v27 = vsub.s32 3, %v1969_v22 }
  0x52   :  { %946 = vmatprep.subr.bf16.mxu0 %v1667_v38  ;;  %987 = vmatprep.subr.bf16.mxu1 %v1670_v39  ;;  %v1732_v20 = vld [vmem:[#allocation8 + $0x2f0] ss:$12 sps:$4 sm:$0xff]   ;;  %v1769_v21 = vld [vmem:[#allocation9 + $0x60] sm:$0xff]   ;;  %v1502_v22 = vld [vmem:[%s2026_s7] ss:$0 sm:$0xff] }
  0x53   :  { %v108_v28 = vrot.slane %v103_v25, %v107_v23  ;;  %v116_v29 = vrot.slane %v103_v25, %v115_v24  ;;  %v112_v30 = vrot.slane %v103_v25, %v111_v26  ;;  %v120_v31 = vrot.slane %v103_v25, %v119_v27  ;;  %v1770_v25 = vld [vmem:[#allocation9 + $0x20] sm:$0xff]   ;;  %v1771_v27 = vld [vmem:[#allocation9 + $0x58] sm:$0xff]  }
  0x55   :  { %947 = vmatpush1.bf16.msra.mxu0 %v1665_v40  ;;  %988 = vmatpush1.bf16.msra.mxu1 %v1668_v41 }
  0x56   :  { %948 = vmatprep.subr.bf16.mxu0 %v1673_v42  ;;  %989 = vmatprep.subr.bf16.mxu1 %v1676_v43 }
  0x59   :  { %949 = vmatpush1.bf16.msra.mxu0 %v1671_v44  ;;  %990 = vmatpush1.bf16.msra.mxu1 %v1674_v45 }
  0x5a   :  { %950 = vmatprep.subr.bf16.mxu0 %v1679_v46  ;;  %991 = vmatprep.subr.bf16.mxu1 %v1682_v47  ;;  %v1733_v47 = vld [vmem:[#allocation8 + $0xb0] ss:$12 sps:$4 sm:$0xff]  }
  0x5d   :  { %951 = vmatpush1.bf16.msra.mxu0 %v1677_v48  ;;  %992 = vmatpush1.bf16.msra.mxu1 %v1680_v49  ;;  %v1734_v48 = vld [vmem:[#allocation8 + $0x230] ss:$12 sps:$4 sm:$0xff]  }
  0x5e   :  { %952 = vmatprep.subr.bf16.mxu0 %v1685_v50  ;;  %993 = vmatprep.subr.bf16.mxu1 %v1688_v51  ;;  %v1735_v50 = vld [vmem:[#allocation8 + $0x158] ss:$12 sps:$4 sm:$0xff]  }
  0x5f   :  { %v1736_v51 = vld [vmem:[#allocation8 + $0x2d8] ss:$12 sps:$4 sm:$0xff]  }
  0x61   :  { %953 = vmatpush2.bf16.msra.mxu0 %v1683_v52  ;;  %994 = vmatpush2.bf16.msra.mxu1 %v1686_v53  ;;  %v1737_v52 = vld [vmem:[#allocation8 + $0x98] ss:$12 sps:$4 sm:$0xff]  }
  0x62   :  { %954 = vmatprep.subr.bf16.mxu0 %v1691_v54  ;;  %995 = vmatprep.subr.bf16.mxu1 %v1694_v55  ;;  %v1738_v53 = vld [vmem:[#allocation8 + $0x218] ss:$12 sps:$4 sm:$0xff]   ;;  %v1739_v54 = vld [vmem:[#allocation8 + $0x140] ss:$12 sps:$4 sm:$0xff]  }
  0x63   :  { %v1740_v55 = vld [vmem:[#allocation8 + $0x2c0] ss:$12 sps:$4 sm:$0xff]  }
  0x65   :  { %955 = vmatpush2.bf16.msra.mxu0 %v1689_v56  ;;  %996 = vmatpush2.bf16.msra.mxu1 %v1692_v57  ;;  %v1741_v56 = vld [vmem:[#allocation8 + $0x80] ss:$12 sps:$4 sm:$0xff]  }
  0x66   :  { %956 = vmatprep.subr.bf16.mxu0 %v1697_v58  ;;  %997 = vmatprep.subr.bf16.mxu1 %v1700_v59  ;;  %v1742_v57 = vld [vmem:[#allocation8 + $0x200] ss:$12 sps:$4 sm:$0xff]   ;;  %v1743_v58 = vld [vmem:[#allocation8 + $0x128] ss:$12 sps:$4 sm:$0xff]  }
  0x67   :  { %v1744_v59 = vld [vmem:[#allocation8 + $0x2a8] ss:$12 sps:$4 sm:$0xff]  }
  0x69   :  { %957 = vmatpush2.bf16.msra.mxu0 %v1695_v60  ;;  %998 = vmatpush2.bf16.msra.mxu1 %v1698_v61  ;;  %v1745_v60 = vld [vmem:[#allocation8 + $0x68] ss:$12 sps:$4 sm:$0xff]  }
  0x6a   :  { %958 = vmatprep.subr.bf16.mxu0 %v1703_v62  ;;  %999 = vmatprep.subr.bf16.mxu1 %v1706_v63  ;;  %v1746_v61 = vld [vmem:[#allocation8 + $0x1e8] ss:$12 sps:$4 sm:$0xff]   ;;  %v1747_v62 = vld [vmem:[#allocation8 + $0x110] ss:$12 sps:$4 sm:$0xff]  }
  0x6b   :  { %v1748_v63 = vld [vmem:[#allocation8 + $0x290] ss:$12 sps:$4 sm:$0xff]  }
  0x6d   :  { %959 = vmatpush2.bf16.msra.mxu0 %v1701_v1  ;;  %1000 = vmatpush2.bf16.msra.mxu1 %v1704_v2  ;;  %v1749_v1 = vld [vmem:[#allocation8 + $0x50] ss:$12 sps:$4 sm:$0xff]  }
  0x6e   :  { %960 = vmatprep.subr.bf16.mxu0 %v1709_v3  ;;  %1001 = vmatprep.subr.bf16.mxu1 %v1712_v4  ;;  %v1750_v2 = vld [vmem:[#allocation8 + $0x1d0] ss:$12 sps:$4 sm:$0xff]   ;;  %v1751_v3 = vld [vmem:[#allocation8 + $0xf8] ss:$12 sps:$4 sm:$0xff]  }
  0x6f   :  { %v1752_v4 = vld [vmem:[#allocation8 + $0x278] ss:$12 sps:$4 sm:$0xff]  }
  0x71   :  { %961 = vmatpush2.bf16.msra.mxu0 %v1707_v5  ;;  %1002 = vmatpush2.bf16.msra.mxu1 %v1710_v6  ;;  %v1753_v5 = vld [vmem:[#allocation8 + $0x38] ss:$12 sps:$4 sm:$0xff]  }
  0x72   :  { %962 = vmatprep.subr.bf16.mxu0 %v1715_v7  ;;  %1003 = vmatprep.subr.bf16.mxu1 %v1718_v8  ;;  %v1754_v6 = vld [vmem:[#allocation8 + $0x1b8] ss:$12 sps:$4 sm:$0xff]   ;;  %v1755_v7 = vld [vmem:[#allocation8 + $0xe0] ss:$12 sps:$4 sm:$0xff]  }
  0x73   :  { %v1756_v8 = vld [vmem:[#allocation8 + $0x260] ss:$12 sps:$4 sm:$0xff]  }
  0x75   :  { %963 = vmatpush2.bf16.msra.mxu0 %v1713_v9  ;;  %1004 = vmatpush2.bf16.msra.mxu1 %v1716_v10  ;;  %v1757_v9 = vld [vmem:[#allocation8 + $0x20] ss:$12 sps:$4 sm:$0xff]  }
  0x76   :  { %964 = vmatprep.subr.bf16.mxu0 %v1721_v11  ;;  %1005 = vmatprep.subr.bf16.mxu1 %v1724_v12  ;;  %v1758_v10 = vld [vmem:[#allocation8 + $0x1a0] ss:$12 sps:$4 sm:$0xff]   ;;  %v1759_v11 = vld [vmem:[#allocation8 + $0xc8] ss:$12 sps:$4 sm:$0xff]  }
  0x77   :  { %v1760_v12 = vld [vmem:[#allocation8 + $0x248] ss:$12 sps:$4 sm:$0xff]  }
  0x79   :  { %965 = vmatpush2.bf16.msra.mxu0 %v1719_v13  ;;  %1006 = vmatpush2.bf16.msra.mxu1 %v1722_v14  ;;  %v1761_v13 = vld [vmem:[#allocation8 + $0x8] ss:$12 sps:$4 sm:$0xff]  }
  0x7a   :  { %966 = vmatprep.subr.bf16.mxu0 %v1727_v15  ;;  %1007 = vmatprep.subr.bf16.mxu1 %v1730_v16  ;;  %v1762_v14 = vld [vmem:[#allocation8 + $0x188] ss:$12 sps:$4 sm:$0xff]   ;;  %v1763_v15 = vld [vmem:[#allocation9 + $0x78] sm:$0xff]  }
  0x7b   :  { %v1764_v16 = vld [vmem:[#allocation9 + $0x38] sm:$0xff]  }
  0x7d   :  { %967 = vmatpush2.bf16.msra.mxu0 %v1725_v17  ;;  %1008 = vmatpush2.bf16.msra.mxu1 %v1728_v18  ;;  %v1765_v17 = vld [vmem:[#allocation9 + $0x70] sm:$0xff]  }
  0x7e   :  { %1527 = vmatprep.subr.bf16.mxu0 %v1731_v19  ;;  %1549 = vmatprep.subr.bf16.mxu1 %v1732_v20  ;;  %v1766_v18 = vld [vmem:[#allocation9 + $0x30] sm:$0xff]   ;;  %v1767_v19 = vld [vmem:[#allocation9 + $0x68] sm:$0xff]  }
  0x7f   :  { %v1768_v20 = vld [vmem:[#allocation9 + $0x28] sm:$0xff]  }
  0xff   :  { %v195_v32 = vpop.f32.mrf.mxu0  ;;  %v266_v33 = vpop.f32.mrf.mxu1 }
 0x100   :  { %v196_v34 = vadd.f32 %v195_v32, %v108_v28  ;;  %v267_v35 = vadd.f32 %v266_v33, %v116_v29  ;;  %v1772_v28 = vld [vmem:[#allocation9 + $0x18] sm:$0xff]   ;;  %v1773_v29 = vld [vmem:[#allocation9 + $0x50] sm:$0xff]   ;;  %v1776_v32 = vld [vmem:[#allocation9 + $0x8] sm:$0xff]  }
 0x101   :  { %v197_v36 = vpop.f32.mrf.mxu0  ;;  %v268_v37 = vpop.f32.mrf.mxu1  ;;  %v1777_v33 = vld [vmem:[#allocation9 + $0x40] sm:$0xff]  }
 0x102   :  { %v273_v38 = vmax.f32 %v267_v35, 0.0  ;;  %v198_v39 = vadd.f32 %v197_v36, %v112_v30  ;;  %v269_v40 = vadd.f32 %v268_v37, %v120_v31  ;;  %v271_v41 = vmax.f32 %v196_v34, 0.0  ;;  %v1774_v30 = vld [vmem:[#allocation9 + $0x10] sm:$0xff]   ;;  %v1775_v31 = vld [vmem:[#allocation9 + $0x48] sm:$0xff]   ;;  %v1778_v34 = vld [vmem:[#allocation9] sm:$0xff]  }
 0x103   :  { %v1779_v35 = vld [vmem:[#allocation9 + $0xb8] sm:$0xff]   ;;  %v1780_v36 = vld [vmem:[#allocation9 + $0xb0] sm:$0xff]   ;;  %v1781_v37 = vld [vmem:[#allocation9 + $0xa8] sm:$0xff]  }
 0x104   :  { %v272_v42 = vmax.f32 %v198_v39, 0.0  ;;  %v274_v43 = vmax.f32 %v269_v40, 0.0  ;;  %v1984_v44 = vpack.c.bf16 %v273_v38, %v273_v38  ;;  %v1986_v49 = vpack.c.bf16 %v271_v41, %v271_v41  ;;  %v1782_v38 = vld [vmem:[#allocation9 + $0xa0] sm:$0xff]   ;;  %v1783_v39 = vld [vmem:[#allocation9 + $0x98] sm:$0xff]   ;;  %v1784_v40 = vld [vmem:[#allocation9 + $0x90] sm:$0xff]  }
 0x105   :  { %v1785_v41 = vld [vmem:[#allocation9 + $0x88] sm:$0xff]  }
 0x106   :  { %v276_v45 = vpack.c.bf16 %v272_v42, %v272_v42  ;;  %v278_v46 = vpack.c.bf16 %v274_v43, %v274_v43  ;;  %v1786_v42 = vld [vmem:[#allocation9 + $0x80] sm:$0xff]   ;;  %v407_v43 = vld [vmem:[%s2024_s5] sm:$0x7] }
 0x108   :  { %968 = vmatprep.mubr.bf16.mxu0 %v276_v45  ;;  %1009 = vmatprep.mubr.bf16.mxu1 %v278_v46 }
 0x109   :  { %969 = vmatmul.mubr.bf16.vlgmr.msra.gmra.mxu0 %v1986_v49  ;;  %1010 = vmatmul.mubr.bf16.vlgmr.msra.gmra.mxu1 %v1984_v44 }
 0x10a   :  { %1528 = vmatpush3.bf16.msra.mxu0 %v1733_v47  ;;  %1550 = vmatpush3.bf16.msra.mxu1 %v1734_v48 }
 0x10b   :  { %1050 = vmatprep.mubr.bf16.mxu0 %v276_v45  ;;  %1090 = vmatprep.mubr.bf16.mxu1 %v278_v46  ;;  %v416_v45 = vrot.slane %v407_v43, %v111_v26 }
 0x10c   :  { %1529 = vmatprep.subr.bf16.mxu0 %v1735_v50  ;;  %1551 = vmatprep.subr.bf16.mxu1 %v1736_v51 }
 0x10e   :  { %1530 = vmatpush3.bf16.msra.mxu0 %v1737_v52  ;;  %1552 = vmatpush3.bf16.msra.mxu1 %v1738_v53 }
 0x10f   :  { %1531 = vmatprep.subr.bf16.mxu0 %v1739_v54  ;;  %1553 = vmatprep.subr.bf16.mxu1 %v1740_v55 }
 0x112   :  { %1532 = vmatpush3.bf16.msra.mxu0 %v1741_v56  ;;  %1554 = vmatpush3.bf16.msra.mxu1 %v1742_v57 }
 0x113   :  { %1533 = vmatprep.subr.bf16.mxu0 %v1743_v58  ;;  %1555 = vmatprep.subr.bf16.mxu1 %v1744_v59 }
 0x116   :  { %1534 = vmatpush3.bf16.msra.mxu0 %v1745_v60  ;;  %1556 = vmatpush3.bf16.msra.mxu1 %v1746_v61  ;;  %v420_v61 = vrot.slane %v407_v43, %v115_v24 }
 0x117   :  { %1535 = vmatprep.subr.bf16.mxu0 %v1747_v62  ;;  %1557 = vmatprep.subr.bf16.mxu1 %v1748_v63 }
 0x11a   :  { %1536 = vmatpush3.bf16.msra.mxu0 %v1749_v1  ;;  %1558 = vmatpush3.bf16.msra.mxu1 %v1750_v2 }
 0x11b   :  { %1537 = vmatprep.subr.bf16.mxu0 %v1751_v3  ;;  %1559 = vmatprep.subr.bf16.mxu1 %v1752_v4 }
 0x11e   :  { %1538 = vmatpush3.bf16.msra.mxu0 %v1753_v5  ;;  %1560 = vmatpush3.bf16.msra.mxu1 %v1754_v6 }
 0x11f   :  { %1539 = vmatprep.subr.bf16.mxu0 %v1755_v7  ;;  %1561 = vmatprep.subr.bf16.mxu1 %v1756_v8 }
 0x122   :  { %1540 = vmatpush3.bf16.msra.mxu0 %v1757_v9  ;;  %1562 = vmatpush3.bf16.msra.mxu1 %v1758_v10 }
 0x123   :  { %1541 = vmatprep.subr.bf16.mxu0 %v1759_v11  ;;  %1563 = vmatprep.subr.bf16.mxu1 %v1760_v12 }
 0x126   :  { %1542 = vmatpush3.bf16.msra.mxu0 %v1761_v13  ;;  %1564 = vmatpush3.bf16.msra.mxu1 %v1762_v14 }
 0x127   :  { %1571 = vmatprep.subr.bf16.mxu0 %v1763_v15  ;;  %1602 = vmatprep.subr.bf16.mxu1 %v1907_v0 }
 0x129   :  { %1051 = vmatmul.mubr.bf16.vlgmr.msra.gmra.mxu0 %v1986_v49  ;;  %1091 = vmatmul.mubr.bf16.vlgmr.msra.gmra.mxu1 %v1984_v44  ;;  %v412_v44 = vrot.slane %v407_v43, %v107_v23 }
 0x12a   :  { %1572 = vmatpush3.bf16.msra.mxu0 %v1764_v16  ;;  %1603 = vmatpush3.bf16.msra.mxu1 %v1779_v35 }
 0x12b   :  { %1573 = vmatprep.subr.bf16.mxu0 %v1765_v17  ;;  %1604 = vmatprep.subr.bf16.mxu1 %v1907_v0 }
 0x12c   :  { %1618 = vmatprep.mubr.msk.bf16.mxu1 %vm1908_vm1, %v1907_v0 }
 0x12e   :  { %1574 = vmatpush3.bf16.msra.mxu0 %v1766_v18  ;;  %1605 = vmatpush3.bf16.msra.mxu1 %v1780_v36 }
 0x12f   :  { %1575 = vmatprep.subr.bf16.mxu0 %v1767_v19  ;;  %1606 = vmatprep.subr.bf16.mxu1 %v1907_v0 }
 0x132   :  { %1576 = vmatpush3.bf16.msra.mxu0 %v1768_v20  ;;  %1607 = vmatpush3.bf16.msra.mxu1 %v1781_v37 }
 0x133   :  { %1577 = vmatprep.subr.bf16.mxu0 %v1769_v21  ;;  %1608 = vmatprep.subr.bf16.mxu1 %v1907_v0  ;;  %v1384_v21 = vstv %s2019_s0 }
 0x136   :  { %1578 = vmatpush3.bf16.msra.mxu0 %v1770_v25  ;;  %1609 = vmatpush3.bf16.msra.mxu1 %v1782_v38 }
 0x137   :  { %1579 = vmatprep.subr.bf16.mxu0 %v1771_v27  ;;  %1610 = vmatprep.subr.bf16.mxu1 %v1907_v0 }
 0x13a   :  { %1580 = vmatpush3.bf16.msra.mxu0 %v1772_v28  ;;  %1611 = vmatpush3.bf16.msra.mxu1 %v1783_v39 }
 0x13b   :  { %1581 = vmatprep.subr.bf16.mxu0 %v1773_v29  ;;  %1612 = vmatprep.subr.bf16.mxu1 %v1907_v0 }
 0x13e   :  { %1582 = vmatpush3.bf16.msra.mxu0 %v1774_v30  ;;  %1613 = vmatpush3.bf16.msra.mxu1 %v1784_v40 }
 0x13f   :  { %1583 = vmatprep.subr.bf16.mxu0 %v1775_v31  ;;  %1614 = vmatprep.subr.bf16.mxu1 %v1907_v0 }
 0x142   :  { %1584 = vmatpush3.bf16.msra.mxu0 %v1776_v32  ;;  %1615 = vmatpush3.bf16.msra.mxu1 %v1785_v41 }
 0x143   :  { %1585 = vmatprep.subr.bf16.mxu0 %v1777_v33  ;;  %1616 = vmatprep.subr.bf16.mxu1 %v1907_v0 }
 0x146   :  { %1586 = vmatpush3.bf16.msra.mxu0 %v1778_v34  ;;  %1617 = vmatpush3.bf16.msra.mxu1 %v1786_v42 }
 0x1c9   :  { %v970_v46 = vpop.f32.mrf.mxu0  ;;  %v1011_v47 = vpop.f32.mrf.mxu1 }
 0x1ca   :  { %v971_v48 = vadd.f32 %v970_v46, %v412_v44 }
 0x1cb   :  { %v972_v49 = vpop.f32.mrf.mxu0  ;;  %v1013_v50 = vpop.f32.mrf.mxu1 }
 0x1cc   :  { %v1012_v51 = vadd.f32 %v1011_v47, %v971_v48  ;;  %v973_v52 = vadd.f32 %v972_v49, %v416_v45 }
 0x1cd   :  { %v974_v53 = vpop.f32.mrf.mxu0  ;;  %v1015_v54 = vpop.f32.mrf.mxu1 }
 0x1ce   :  { %v1014_v0 = vadd.f32 %v1013_v50, %v973_v52  ;;  %v1098_v55 = vmax.f32 %v1012_v51, 0.0 }
 0x1cf   :  { %v975_v56 = vpop.f32.mrf.mxu0  ;;  %v1016_v57 = vpop.f32.mrf.mxu1 }
 0x1d0   :  { %v1099_v58 = vmax.f32 %v1014_v0, 0.0  ;;  %v1101_v60 = vpack.c.bf16 %v1098_v55, %v1098_v55 }
 0x1d2   :  { %v1102_v59 = vpack.c.bf16 %v1099_v58, %v1099_v58 }
 0x1d4   :  { %1335 = vmatprep.mubr.bf16.mxu0 %v1102_v59 }
 0x1d5   :  { %1336 = vmatmul.mubr.bf16.vlgmr.msra.gmra.mxu0 %v1101_v60 }
 0x1e9   :  { %v1543_v23 = vpop.f32.mrf.mxu0  ;;  %v1565_v26 = vpop.f32.mrf.mxu1 }
 0x1eb   :  { %v1544_v62 = vpop.f32.mrf.mxu0  ;;  %v1566_v63 = vpop.f32.mrf.mxu1 }
 0x1ec   :  { %v1545_v1 = vadd.f32 %v1544_v62, %v1543_v23  ;;  %v1567_v5 = vadd.f32 %v1566_v63, %v1565_v26 }
 0x1ed   :  { %v1546_v2 = vpop.f32.mrf.mxu0  ;;  %v1568_v3 = vpop.f32.mrf.mxu1 }
 0x1ee   :  { %v1053_v4 = vadd.f32 %v1545_v1, %v420_v61 }
 0x1ef   :  { %v1547_v6 = vpop.f32.mrf.mxu0  ;;  %v1569_v7 = vpop.f32.mrf.mxu1 }
 0x1f0   :  { %v1093_v8 = vadd.f32 %v1567_v5, %v1053_v4 }
 0x1f2   :  { %v1100_v9 = vmax.f32 %v1093_v8, 0.0 }
 0x1f4   :  { %v1103_v10 = vpack.c.bf16 %v1100_v9, %v1100_v9 }
 0x1f6   :  { %1619 = vmatmul.mubr.bf16.vlgmr.msra.gmra.mxu1 %v1103_v10 }
 0x295   :  { %v1587_v11 = vpop.f32.mrf.mxu0 }
 0x297   :  { %v1588_v12 = vpop.f32.mrf.mxu0 }
 0x298   :  { %v1589_v15 = vadd.f32 %v1588_v12, %v1587_v11 }
 0x299   :  { %v1590_v13 = vpop.f32.mrf.mxu0 }
 0x29a   :  { %v1338_v24 = vadd.f32 %v1589_v15, %v1502_v22 }
 0x29b   :  { %v1591_v14 = vpop.f32.mrf.mxu0 }
 0x2b6   :  { %v1377_v16 = vpop.f32.mrf.mxu1 }
 0x2b7   :  { %v1378_v17 = vadd.f32 %v1377_v16, %v1338_v24 }
 0x2b8   :  { %v1620_v18 = vpop.f32.mrf.mxu1 }
 0x2b9   :  { %1787 = vtanh.f32 %v1378_v17 }
 0x2ba   :  { %v1380_v19 = vpop.f32.mrf.mxu1 }
 0x2bc   :  { %v1621_v20 = vpop.f32.mrf.mxu1 }
 0x2c6   :  { %v1788_v25 = vpop.eup %1787 }
 0x2c7   :  { %v1385_v27 = vmul.f32 %v1788_v25, %v1384_v21 }
 0x2c9   :  { %1386 = vst [vmem:[#allocation11] sm:$0xff] %v1385_v27 }
 0x2ca   :  { %1880 = shalt.err (!%p1877_p10)
}
 0x2cb   :  { %1396 = dma.vmem_to_hbm [thread:$0]  %s1394_s12, 128, %s2027_s8, [#allocation5]  }
 0x2cc   :  { %1895 = dma.done.wait [#allocation5], 128  }
 0x2cd   :  { %1896 = vsyncadd [#allocation5], 4294967168 }
 0x2ce   :  { %1400 = vsyncpa [#allocation4], 1 }
 0x2cf   :  { %1401 = vsyncpa [#allocation7], 1 }
 0x2d0   :  { %1402 = vsyncpa [#allocation10], 1 }
 0x2d1   :  { %1403 = vsyncpa [#allocation5], 1 }

</bundles_post_ra>
